<compile_context>
chip_gen: v7x
topology: tpu7x:2x2x1
jax: 0.10.0
libtpu: 0.0.40
codegen_flags: <defaults>
</compile_context>

<pallas_src>
import functools

import jax
import jax.numpy as jnp
from jax.experimental import pallas as pl
from jax.experimental.pallas import tpu as pltpu


# ----------------------------- Pallas kernel -------------------------------

def ffnet_kernel(x_ref, w0_ref, b0_ref, w1_ref, b1_ref, o_ref, *, compute_dtype):
    """Fused 2-layer NDN MLP tile: relu(relu(x@W0 + b0) @ W1 + b1)."""
    # x arrives f32 straight from HBM; cast on the VPU (free slack) here rather
    # than in a separate wrapper-side XLA pass.
    x = x_ref[...].astype(compute_dtype)                             # (TN, D)
    # Layer 0: NDNLayer = matmul (MXU, f32 accum) + bias + relu
    h = jnp.dot(x, w0_ref[...], preferred_element_type=jnp.float32) + b0_ref[...]
    h = jnp.maximum(h, 0.0).astype(compute_dtype)                    # (TN, F0p)
    # Layer 1: NDNLayer = matmul + bias + relu; output block is (TN, F1) f32
    y = jnp.dot(h, w1_ref[...], preferred_element_type=jnp.float32) + b1_ref[...]
    o_ref[...] = jnp.maximum(y, 0.0).astype(o_ref.dtype)


# ----------------------------- Wrapper --------------------------------------

def _round_up(v, m):
    return ((v + m - 1) // m) * m


def _choose_tile(N, tile_n):
    """Batch tile: large (amortize ~0.35us/step), 16-row aligned, and a divisor
    of N (multiple of 256) when possible so no x pad copy is needed."""
    if N <= tile_n:
        return max(_round_up(N, 16), 16)
    start = tile_n - (tile_n % 256)
    for t in range(start, 255, -256):
        if N % t == 0:
            return t
    return _round_up(tile_n, 16)


def ffnetwork_forward(x, w0, b0, w1, b1, *, tile_n=4096, compute_dtype=jnp.bfloat16):
    """Tiled, pipelined forward.  x: [N, D] f32, w0: [D, F0], w1: [F0, F1]."""
    x = x.astype(jnp.float32)
    N, D = x.shape
    F0 = w0.shape[1]
    F1 = w1.shape[1]

    # --- lane-dense padding of F0 only (zeros; zero bias cols => relu(0)=0 and
    #     zero w1 rows => no leakage into layer 1).  F1 / output is NOT padded.
    F0p = _round_up(F0, 128)
    w0p = jnp.zeros((D, F0p), jnp.float32).at[:, :F0].set(w0).astype(compute_dtype)
    b0p = jnp.zeros((1, F0p), jnp.float32).at[:, :F0].set(b0)
    w1p = jnp.zeros((F0p, F1), jnp.float32).at[:F0, :].set(w1).astype(compute_dtype)
    b1p = b1.reshape(1, F1).astype(jnp.float32)

    # --- batch tiling ---
    tn = _choose_tile(N, tile_n)
    Np = _round_up(N, tn)
    if Np != N:
        x = jnp.pad(x, ((0, Np - N), (0, 0)))
    n_tiles = Np // tn

    wbytes = jnp.dtype(compute_dtype).itemsize
    cost = pl.CostEstimate(
        flops=2 * Np * (D * F0p + F0p * F1),
        transcendentals=0,
        bytes_accessed=(Np * D * 4                      # x (f32, read once)
                        + D * F0p * wbytes + F0p * F1 * wbytes
                        + (F0p + F1) * 4
                        + Np * F1 * 4),                 # unpadded f32 output
    )

    out = pl.pallas_call(
        functools.partial(ffnet_kernel, compute_dtype=compute_dtype),
        out_shape=jax.ShapeDtypeStruct((Np, F1), jnp.float32),
        grid=(n_tiles,),
        in_specs=[
            pl.BlockSpec((tn, D), lambda i: (i, 0)),      # x tile streams (f32)
            pl.BlockSpec((D, F0p), lambda i: (0, 0)),     # weights VMEM-resident
            pl.BlockSpec((1, F0p), lambda i: (0, 0)),
            pl.BlockSpec((F0p, F1), lambda i: (0, 0)),    # F1 == full dim -> legal
            pl.BlockSpec((1, F1), lambda i: (0, 0)),
        ],
        out_specs=pl.BlockSpec((tn, F1), lambda i: (i, 0)),
        compiler_params=pltpu.CompilerParams(
            # Megacore sharding of the batch axis; default scoped VMEM limit is
            # ample (~10 MiB need at tn=4096), so no vmem_limit_bytes override.
            dimension_semantics=("parallel",),
        ),
        cost_estimate=cost,
    )(x, w0p, b0p, w1p, b1p)

    # Only batch-row cropping remains (feature dim is already unpadded).
    return out if Np == N else out[:N]


# ----------------------------- Glue (plain JAX) ------------------------------

def preprocess_input(inputs, input_dims_list, network_type="normal"):
    """FFnetwork.preprocess_input semantics for list inputs (plain-JAX glue).

    'normal': concat along filter dim; 'add': sum; 'mult': x1*(1+x2)*... (clamped).
    """
    # TODO(synk): only the single-stimulus / NDNLayer ('normal') path is fused in
    # Pallas; other FFnetwork layer types (conv/readout/scaffold/...) are out of scope.
    if not isinstance(inputs, (list, tuple)):
        return inputs
    if len(inputs) == 1:
        return inputs[0]
    nt = inputs[0].shape[0]
    x = inputs[0].reshape([-1] + list(input_dims_list[0]))
    for mm in range(1, len(inputs)):
        xm = inputs[mm].reshape([-1] + list(input_dims_list[mm]))
        if network_type == "add":
            x = x + xm
        elif network_type == "mult":
            x = x * jnp.clip(xm + 1.0, a_min=0.0)
        else:  # 'normal' -> concatenate along filter dim (axis 1)
            x = jnp.concatenate((x, xm), axis=1)
    return x.reshape(nt, -1)


def ffnetwork_reference(x, w0, b0, w1, b1, compute_dtype=jnp.bfloat16):
    """Plain-JAX reference with the same operand-dtype / f32-accum numerics."""
    h = jnp.dot(x.astype(compute_dtype), w0.astype(compute_dtype),
                preferred_element_type=jnp.float32) + b0
    h = jnp.maximum(h, 0.0).astype(compute_dtype)
    y = jnp.dot(h, w1.astype(compute_dtype),
                preferred_element_type=jnp.float32) + b1
    return jnp.maximum(y, 0.0)


if __name__ == "__main__":
    # input_dims = [C, W, H, lags] = [4, 8, 8, 1]  ->  D = 256
    C, W, H, L = 4, 8, 8, 1
    D = C * W * H * L
    N = 16        # batch (time points) -- small demo size
    F0 = 64       # layer-0 num_filters
    F1 = 32       # layer-1 num_filters

    key = jax.random.PRNGKey(0)
    kx, k0, kb0, k1, kb1 = jax.random.split(key, 5)

    # Single external stimulus input, already flattened as [N, C*W*H*lags]
    x = jax.random.normal(kx, (N, D), dtype=jnp.float32)

    # Deterministic NDNLayer weights/biases (synthetic, no checkpoint)
    w0 = jax.random.normal(k0, (D, F0), dtype=jnp.float32) * (1.0 / D ** 0.5)
    b0 = jax.random.normal(kb0, (1, F0), dtype=jnp.float32) * 0.1
    w1 = jax.random.normal(k1, (F0, F1), dtype=jnp.float32) * (1.0 / F0 ** 0.5)
    b1 = jax.random.normal(kb1, (1, F1), dtype=jnp.float32) * 0.1

    # preprocess_input: single input -> pass-through (ffnet_type='normal')
    xin = preprocess_input([x], [[C, W, H, L]], network_type="normal")

    out = ffnetwork_forward(xin, w0, b0, w1, b1)
    out = jax.block_until_ready(out)

    ref = ffnetwork_reference(xin, w0, b0, w1, b1)
    assert out.shape == (N, F1)
    assert jnp.allclose(out, ref, atol=1e-2, rtol=1e-2), "mismatch vs reference"

    print("KERNEL_OK")
</pallas_src>

<mosaic_0001>
module attributes {stable_mosaic.version = 11 : i64} {
  func.func @ffnet_kernel(%arg0: i32, %arg1: memref<16x256xf32, #tpu.memory_space<vmem>>, %arg2: memref<256x128xbf16, #tpu.memory_space<vmem>>, %arg3: memref<1x128xf32, #tpu.memory_space<vmem>>, %arg4: memref<128x32xbf16, #tpu.memory_space<vmem>>, %arg5: memref<1x32xf32, #tpu.memory_space<vmem>>, %arg6: memref<16x32xf32, #tpu.memory_space<vmem>>) attributes {dimension_semantics = [#tpu.dimension_semantics<parallel>], iteration_bounds = array<i64: 1>, scalar_prefetch = 0 : i64, scratch_operands = 0 : i64, tpu.core_type = #tpu.core_type<tc>, window_params = [{transform_indices = @transform_0, window_bounds = array<i64: 16, 256>}, {pipeline_mode = #tpu.pipeline_mode<synchronous>, transform_indices = @transform_1, window_bounds = array<i64: 256, 128>}, {pipeline_mode = #tpu.pipeline_mode<synchronous>, transform_indices = @transform_2, window_bounds = array<i64: 1, 128>}, {pipeline_mode = #tpu.pipeline_mode<synchronous>, transform_indices = @transform_3, window_bounds = array<i64: 128, 32>}, {pipeline_mode = #tpu.pipeline_mode<synchronous>, transform_indices = @transform_4, window_bounds = array<i64: 1, 32>}, {transform_indices = @transform_5, window_bounds = array<i64: 16, 32>}]} {
    %c0 = arith.constant 0 : index
    %c0_0 = arith.constant 0 : index
    %0 = vector.load %arg1[%c0, %c0_0] : memref<16x256xf32, #tpu.memory_space<vmem>>, vector<16x256xf32>
    %1 = arith.truncf %0 : vector<16x256xf32> to vector<16x256xbf16>
    %c0_1 = arith.constant 0 : index
    %c0_2 = arith.constant 0 : index
    %2 = vector.load %arg2[%c0_1, %c0_2] : memref<256x128xbf16, #tpu.memory_space<vmem>>, vector<256x128xbf16>
    %cst = arith.constant dense<0.000000e+00> : vector<16x128xf32>
    %3 = tpu.matmul %1, %2, %cst {dimension_numbers = #tpu.dot_dimension_numbers<[1], [0], [0], [1], [0, 0, 1, 1], [], []>} : vector<16x256xbf16>, vector<256x128xbf16>, vector<16x128xf32> -> vector<16x128xf32>
    %c0_3 = arith.constant 0 : index
    %c0_4 = arith.constant 0 : index
    %4 = vector.load %arg3[%c0_3, %c0_4] : memref<1x128xf32, #tpu.memory_space<vmem>>, vector<1x128xf32>
    %5 = vector.broadcast %4 : vector<1x128xf32> to vector<16x128xf32>
    %6 = arith.addf %3, %5 : vector<16x128xf32>
    %cst_5 = arith.constant 0.000000e+00 : f32
    %7 = vector.broadcast %cst_5 : f32 to vector<16x128xf32>
    %8 = arith.maximumf %6, %7 : vector<16x128xf32>
    %9 = arith.truncf %8 : vector<16x128xf32> to vector<16x128xbf16>
    %c0_6 = arith.constant 0 : index
    %c0_7 = arith.constant 0 : index
    %10 = vector.load %arg4[%c0_6, %c0_7] : memref<128x32xbf16, #tpu.memory_space<vmem>>, vector<128x32xbf16>
    %cst_8 = arith.constant dense<0.000000e+00> : vector<16x32xf32>
    %11 = tpu.matmul %9, %10, %cst_8 {dimension_numbers = #tpu.dot_dimension_numbers<[1], [0], [0], [1], [0, 0, 1, 1], [], []>} : vector<16x128xbf16>, vector<128x32xbf16>, vector<16x32xf32> -> vector<16x32xf32>
    %c0_9 = arith.constant 0 : index
    %c0_10 = arith.constant 0 : index
    %12 = vector.load %arg5[%c0_9, %c0_10] : memref<1x32xf32, #tpu.memory_space<vmem>>, vector<1x32xf32>
    %13 = vector.broadcast %12 : vector<1x32xf32> to vector<16x32xf32>
    %14 = arith.addf %11, %13 : vector<16x32xf32>
    %cst_11 = arith.constant 0.000000e+00 : f32
    %15 = vector.broadcast %cst_11 : f32 to vector<16x32xf32>
    %16 = arith.maximumf %14, %15 : vector<16x32xf32>
    %c0_12 = arith.constant 0 : index
    %c0_13 = arith.constant 0 : index
    %17 = vector.load %arg6[%c0_12, %c0_13] : memref<16x32xf32, #tpu.memory_space<vmem>>, vector<16x32xf32>
    tpu.vector_store %arg6[%c0_12, %c0_13], %16 {strides = array<i32>} : memref<16x32xf32, #tpu.memory_space<vmem>>, vector<16x32xf32>,
    return
  }
  func.func @transform_0(%arg0: i32) -> (i32, i32) {
    %c0_i32 = arith.constant 0 : i32
    %c0_i32_0 = arith.constant 0 : i32
    return %arg0, %c0_i32 : i32, i32
  }
  func.func @transform_1(%arg0: i32) -> (i32, i32) {
    %c0_i32 = arith.constant 0 : i32
    %c0_i32_0 = arith.constant 0 : i32
    %c0_i32_1 = arith.constant 0 : i32
    return %c0_i32, %c0_i32_0 : i32, i32
  }
  func.func @transform_2(%arg0: i32) -> (i32, i32) {
    %c0_i32 = arith.constant 0 : i32
    %c0_i32_0 = arith.constant 0 : i32
    %c0_i32_1 = arith.constant 0 : i32
    return %c0_i32, %c0_i32_0 : i32, i32
  }
  func.func @transform_3(%arg0: i32) -> (i32, i32) {
    %c0_i32 = arith.constant 0 : i32
    %c0_i32_0 = arith.constant 0 : i32
    %c0_i32_1 = arith.constant 0 : i32
    return %c0_i32, %c0_i32_0 : i32, i32
  }
  func.func @transform_4(%arg0: i32) -> (i32, i32) {
    %c0_i32 = arith.constant 0 : i32
    %c0_i32_0 = arith.constant 0 : i32
    %c0_i32_1 = arith.constant 0 : i32
    return %c0_i32, %c0_i32_0 : i32, i32
  }
  func.func @transform_5(%arg0: i32) -> (i32, i32) {
    %c0_i32 = arith.constant 0 : i32
    %c0_i32_0 = arith.constant 0 : i32
    return %arg0, %c0_i32 : i32, i32
  }
}

</mosaic_0001>

<bundles_post_ra>
// kernel: tpu_custom_call.1
= control target key start
LH: loop header
LB: loop body
LE: loop exit
PB: predicated region body
PF: predicated region fallthrough
CT: control target
= control target key end

     0   :  { %10 = vsyncpa [#allocation3], 0  ;;  %s625_s0 = inlined_call_operand.vmem [shape: f32[16,256], index: 0, kind: input, shape index: {}]   ;;  %s626_s1 = inlined_call_operand.hbm [shape: bf16[256,128], index: 1, kind: input, shape index: {}]   ;;  %s627_s2 = inlined_call_operand.vmem [shape: f32[1,128], index: 2, kind: input, shape index: {}]   ;;  %s628_s3 = inlined_call_operand.vmem [shape: bf16[128,32], index: 3, kind: input, shape index: {}]   ;;  %s629_s4 = inlined_call_operand.vmem [shape: f32[1,32], index: 4, kind: input, shape index: {}]   ;;  %s630_s5 = inlined_call_operand.hbm [shape: f32[16,32], index: 5, kind: output, shape index: {}]  }
   0x1   :  { %11 = vsyncpa [#allocation4], 0  ;;  %s512_s18 = smov [#allocation2]   ;;  %s464_s22 = scalar_lea.hbm %s626_s1, 2048 }
   0x2   :  { %s19_s19 = sshll.u32 %s512_s18, 4  ;;  %p465_p0 = scmp.ne.s32.totalorder %s626_s1, %s464_s22  ;;  %s20_s19 = int_to_ptr.vmem [resolvable:$true] %s19_s19 }
   0x3   :  { %p468_p1 = scmp.lt.u32.totalorder %s464_s22, %s626_s1 }
   0x5   :  { %p470_p2 = pnand %p468_p1, %p465_p0 }
   0x7   :  { %473 = shalt.err (!%p470_p2)
}
   0x8   :  { %s474_s27 = scalar_lea.vmem %s20_s19, 2048  ;;  %p479_p4 = scmp.lt.s32.totalorder %s20_s19, %s20_s19 }
   0x9   :  { %p475_p3 = scmp.ne.s32.totalorder %s20_s19, %s474_s27  ;;  %p480_p5 = scmp.lt.s32.totalorder %s474_s27, %s474_s27 }
   0xb   :  { %p481_p6 = por %p480_p5, %p479_p4 }
   0xd   :  { %p482_p7 = pnand %p481_p6, %p475_p3 }
   0xf   :  { %485 = shalt.err (!%p482_p7)
}
  0x10   :  { %s513_s28 = smov 64   ;;  %s514_s29 = smov 4  }
  0x11   :  { %25 = dma.hbm_to_vmem [thread:$0]  %s626_s1, 2048, %s20_s19, [#allocation3], %s513_s28, %s513_s28, %s514_s29  }
  0x12   :  { %508 = dma.done.wait [#allocation3], 2048  }
  0x13   :  { %509 = vsyncadd [#allocation3], 4294965248  ;;  %v515_v0 = vmov 0.0   ;;  %v440_v1 = vld [vmem:[#allocation2 + $0x40] sm:$0xff]   ;;  %v442_v3 = vld [vmem:[#allocation2 + $0x48] sm:$0xff]   ;;  %vm516_vm0 = vmmov 0  }
  0x14   :  { %412 = vmatprep.subr.bf16.mxu1 %v515_v0  ;;  %v441_v2 = vld [vmem:[#allocation2] sm:$0xff]   ;;  %381 = vmatprep.subr.bf16.mxu0 %v440_v1  ;;  %v443_v4 = vld [vmem:[#allocation2 + $0x8] sm:$0xff]   ;;  %v444_v5 = vld [vmem:[#allocation2 + $0x50] sm:$0xff]   ;;  %s517_s1 = smov [#allocation5]   ;;  %vm335_vm1 = vcmask 261120  }
  0x15   :  { %382 = vmatpush3.bf16.msra.mxu0 %v441_v2  ;;  %v445_v6 = vld [vmem:[#allocation2 + $0x10] sm:$0xff]   ;;  %v446_v7 = vld [vmem:[#allocation2 + $0x58] sm:$0xff]   ;;  %v448_v9 = vld [vmem:[#allocation2 + $0x60] sm:$0xff]   ;;  %428 = vmatprep.mubr.msk.bf16.mxu1 %vm516_vm0, %v515_v0 }
  0x16   :  { %383 = vmatprep.subr.bf16.mxu0 %v442_v3  ;;  %v447_v8 = vld [vmem:[#allocation2 + $0x18] sm:$0xff]   ;;  %v449_v10 = vld [vmem:[#allocation2 + $0x20] sm:$0xff]   ;;  %v450_v11 = vld [vmem:[#allocation2 + $0x68] sm:$0xff]  }
  0x17   :  { %v37_v12 = vld [vmem:[%s625_s0 + $0x8] sm:$0xff]  ;;  %v39_v13 = vld [vmem:[%s625_s0 + $0x18] sm:$0xff]  ;;  %v456_v16 = vld [vmem:[%s628_s3] sm:$0xff]  }
  0x18   :  { %v451_v14 = vld [vmem:[#allocation2 + $0x28] sm:$0xff]   ;;  %v41_v15 = vpack.c.bf16 %v39_v13, %v37_v12  ;;  %v452_v17 = vld [vmem:[#allocation2 + $0x70] sm:$0xff]   ;;  %413 = vmatpush3.bf16.msra.mxu1 %v456_v16  ;;  %v454_v20 = vld [vmem:[#allocation2 + $0x78] sm:$0xff]  }
  0x19   :  { %384 = vmatpush3.bf16.msra.mxu0 %v443_v4  ;;  %v457_v18 = vld [vmem:[%s628_s3 + $0x8] sm:$0xff]   ;;  %414 = vmatprep.subr.bf16.mxu1 %v515_v0  ;;  %v453_v19 = vld [vmem:[#allocation2 + $0x30] sm:$0xff]   ;;  %v455_v22 = vld [vmem:[#allocation2 + $0x38] sm:$0xff]  }
  0x1a   :  { %385 = vmatprep.subr.bf16.mxu0 %v444_v5  ;;  %209 = vmatprep.mubr.bf16.mxu0 %v41_v15  ;;  %v458_v21 = vld [vmem:[%s628_s3 + $0x10] sm:$0xff]   ;;  %v36_v23 = vld [vmem:[%s625_s0] sm:$0xff]  ;;  %v459_v25 = vld [vmem:[%s628_s3 + $0x18] sm:$0xff]  }
  0x1b   :  { %v38_v24 = vld [vmem:[%s625_s0 + $0x10] sm:$0xff]  ;;  %v460_v27 = vld [vmem:[%s628_s3 + $0x20] sm:$0xff]   ;;  %v461_v28 = vld [vmem:[%s628_s3 + $0x28] sm:$0xff]  }
  0x1c   :  { %415 = vmatpush3.bf16.msra.mxu1 %v457_v18  ;;  %v40_v26 = vpack.c.bf16 %v38_v24, %v36_v23  ;;  %v462_v29 = vld [vmem:[%s628_s3 + $0x30] sm:$0xff]   ;;  %v463_v30 = vld [vmem:[%s628_s3 + $0x38] sm:$0xff]   ;;  %v355_v32 = vld [vmem:[%s627_s2] ss:$0 sm:$0xff]  ;;  %s343_s2 = sshll.u32 %s517_s1, 4  ;;  %s344_s2 = int_to_ptr.vmem [resolvable:$true] %s343_s2 }
  0x1d   :  { %386 = vmatpush3.bf16.msra.mxu0 %v445_v6  ;;  %416 = vmatprep.subr.bf16.mxu1 %v515_v0  ;;  %v372_v43 = vld [vmem:[%s629_s4] ss:$0 sm:$0xff]  ;;  %s486_s7 = scalar_lea.vmem %s344_s2, 256  ;;  %p491_p9 = scmp.lt.s32.totalorder %s344_s2, %s344_s2 }
  0x1e   :  { %387 = vmatprep.subr.bf16.mxu0 %v446_v7  ;;  %p487_p8 = scmp.ne.s32.totalorder %s344_s2, %s486_s7  ;;  %p492_p10 = scmp.lt.s32.totalorder %s486_s7, %s486_s7 }
  0x20   :  { %417 = vmatpush3.bf16.msra.mxu1 %v458_v21  ;;  %p493_p11 = por %p492_p10, %p491_p9 }
  0x21   :  { %388 = vmatpush3.bf16.msra.mxu0 %v447_v8  ;;  %418 = vmatprep.subr.bf16.mxu1 %v515_v0 }
  0x22   :  { %389 = vmatprep.subr.bf16.mxu0 %v448_v9  ;;  %p494_p12 = pnand %p493_p11, %p487_p8 }
  0x24   :  { %419 = vmatpush3.bf16.msra.mxu1 %v459_v25 }
  0x25   :  { %390 = vmatpush3.bf16.msra.mxu0 %v449_v10  ;;  %420 = vmatprep.subr.bf16.mxu1 %v515_v0 }
  0x26   :  { %391 = vmatprep.subr.bf16.mxu0 %v450_v11 }
  0x28   :  { %421 = vmatpush3.bf16.msra.mxu1 %v460_v27 }
  0x29   :  { %392 = vmatpush3.bf16.msra.mxu0 %v451_v14  ;;  %422 = vmatprep.subr.bf16.mxu1 %v515_v0 }
  0x2a   :  { %393 = vmatprep.subr.bf16.mxu0 %v452_v17 }
  0x2c   :  { %423 = vmatpush3.bf16.msra.mxu1 %v461_v28 }
  0x2d   :  { %394 = vmatpush3.bf16.msra.mxu0 %v453_v19  ;;  %424 = vmatprep.subr.bf16.mxu1 %v515_v0 }
  0x2e   :  { %395 = vmatprep.subr.bf16.mxu0 %v454_v20 }
  0x30   :  { %425 = vmatpush3.bf16.msra.mxu1 %v462_v29 }
  0x31   :  { %396 = vmatpush3.bf16.msra.mxu0 %v455_v22  ;;  %426 = vmatprep.subr.bf16.mxu1 %v515_v0 }
  0x34   :  { %210 = vmatmul.mubr.bf16.vlgmr.msra.gmra.mrb[0].mxu0 %v40_v26  ;;  %427 = vmatpush3.bf16.msra.mxu1 %v463_v30 }
 0x107   :  { %v397_v31 = vpop.f32.mrb[0].mxu0 }
 0x108   :  { %v398_v33 = vpop.f32.mrb[1].mxu0 }
 0x109   :  { %v399_v34 = vadd.f32 %v398_v33, %v397_v31  ;;  %v400_v35 = vpop.f32.mrb[2].mxu0 }
 0x10a   :  { %v401_v36 = vpop.f32.mrb[3].mxu0 }
 0x10b   :  { %v212_v37 = vadd.f32 %v399_v34, %v355_v32  ;;  %v402_v38 = vadd.f32 %v401_v36, %v400_v35 }
 0x10d   :  { %v215_v39 = vadd.f32 %v402_v38, %v355_v32  ;;  %v218_v40 = vmax.f32 %v212_v37, 0.0 }
 0x10f   :  { %v219_v41 = vmax.f32 %v215_v39, 0.0 }
 0x111   :  { %v220_v42 = vpack.c.bf16 %v219_v41, %v218_v40 }
 0x113   :  { %429 = vmatmul.mubr.bf16.vlgmr.msra.gmra.mrb[0].mxu1 %v220_v42 }
 0x1e6   :  { %v326_v44 = vpop.f32.mrb[0].mxu1 }
 0x1e7   :  { %v327_v45 = vadd.f32 %v372_v43, %v326_v44  ;;  %v430_v46 = vpop.f32.mrb[1].mxu1 }
 0x1e8   :  { %v329_v47 = vpop.f32.mrb[2].mxu1 }
 0x1e9   :  { %v333_v48 = vmax.f32 %v327_v45, 0.0  ;;  %v330_v49 = vadd.f32 %v372_v43, %v329_v47  ;;  %v431_v50 = vpop.f32.mrb[3].mxu1 }
 0x1eb   :  { %336 = vst.msk [vmem:[#allocation5] sm:$0xff] %vm335_vm1, %v333_v48  ;;  %v334_v51 = vmax.f32 %v330_v49, 0.0 }
 0x1ed   :  { %337 = vst.msk [vmem:[#allocation5 + $0x8] sm:$0xff] %vm335_vm1, %v334_v51 }
 0x1ee   :  { %497 = shalt.err (!%p494_p12)
}
 0x1ef   :  { %s498_s9 = scalar_lea.hbm %s630_s5, 256 }
 0x1f0   :  { %p499_p13 = scmp.ne.s32.totalorder %s630_s5, %s498_s9  ;;  %p502_p0 = scmp.lt.u32.totalorder %s498_s9, %s630_s5 }
 0x1f2   :  { %p504_p1 = pnand %p502_p0, %p499_p13 }
 0x1f4   :  { %507 = shalt.err (!%p504_p1)
}
 0x1f5   :  { %s518_s14 = smov 128   ;;  %s519_s15 = smov 8  }
 0x1f6   :  { %349 = dma.vmem_to_hbm [thread:$0]  %s344_s2, 256, %s630_s5, [#allocation4], %s518_s14, %s518_s14, %s519_s15  }
 0x1f7   :  { %510 = dma.done.wait [#allocation4], 256  }
 0x1f8   :  { %511 = vsyncadd [#allocation4], 4294967040 }
 0x1f9   :  { %353 = vsyncpa [#allocation3], 1 }
 0x1fa   :  { %354 = vsyncpa [#allocation4], 1 }

</bundles_post_ra>
